<compile_context>
chip_gen: v6e
topology: v6e:2x2x1
jax: 0.10.0
libtpu: 0.0.40
codegen_flags: <defaults>
</compile_context>

<pallas_src>
import functools

import jax
import jax.numpy as jnp
from jax.experimental import pallas as pl
from jax.experimental.pallas import tpu as pltpu


def _round_up(x, m):
    return ((x + m - 1) // m) * m


def _critic_kernel(sa_ref, w1_ref, b1_ref, w2_ref, b2_ref, w3_ref, b3_ref, q_ref):
    """Fused twin-critic forward on one batch tile: 3 bf16 dots, 1 [TB, 2] f32 store."""
    # Layer 1: [TB, 32] @ [32, 2H] -> f32 [TB, 2H]
    h = jnp.dot(sa_ref[...], w1_ref[...], preferred_element_type=jnp.float32)
    h = jnp.maximum(h + b1_ref[...], 0.0).astype(jnp.bfloat16)

    # Layer 2 (block-diagonal fused weight): [TB, 2H] @ [2H, 2H]
    h = jnp.dot(h, w2_ref[...], preferred_element_type=jnp.float32)
    h = jnp.maximum(h + b2_ref[...], 0.0).astype(jnp.bfloat16)

    # Layer 3 (block-diagonal fused weight): [TB, 2H] @ [2H, 2]
    #   column 0 = q1, column 1 = q2
    q = jnp.dot(h, w3_ref[...], preferred_element_type=jnp.float32) + b3_ref[...]
    q_ref[...] = q.astype(q_ref.dtype)


def _dense_fused(sa, fused):
    """Plain-XLA fallback using the same fused bf16 weights (small-batch path)."""
    h = jnp.dot(sa, fused["w1"], preferred_element_type=jnp.float32) + fused["b1"]
    h = jnp.maximum(h, 0.0).astype(jnp.bfloat16)
    h = jnp.dot(h, fused["w2"], preferred_element_type=jnp.float32) + fused["b2"]
    h = jnp.maximum(h, 0.0).astype(jnp.bfloat16)
    q = jnp.dot(h, fused["w3"], preferred_element_type=jnp.float32) + fused["b3"]
    return q[:, 0:1], q[:, 1:2]


def critic_forward(state, action, fused, *, min_pallas_batch=128, force_pallas=False):
    """Pallas equivalent of Critic.forward: returns (q1, q2), each [B, 1] f32."""
    B = state.shape[0]
    # Single concatenated + bf16-cast input so layer 1 is one K=32 MXU dot.
    sa = jnp.concatenate([state, action], axis=-1).astype(jnp.bfloat16)
    d_in = sa.shape[1]
    two_h = fused["w1"].shape[1]

    if B < min_pallas_batch and not force_pallas:
        # At tiny batches kernel launch overhead dominates; use fused XLA path.
        return _dense_fused(sa, fused)

    # Batch tile: >= 2 grid steps when B >= 16 (so v7x's two TensorCores both get
    # work), growing up to 1024 rows per tile for large B.
    if B < 16:
        TB = B                                     # one full-array tile
    else:
        TB = min(1024, _round_up(pl.cdiv(B, 2), 8))
    grid = (pl.cdiv(B, TB),)

    act_spec = pl.BlockSpec((TB, d_in), lambda i: (i, 0))
    full_spec = lambda shape: pl.BlockSpec(shape, lambda i: (0, 0))  # VMEM-resident

    out = pl.pallas_call(
        _critic_kernel,
        out_shape=jax.ShapeDtypeStruct((B, 2), jnp.float32),
        grid=grid,
        in_specs=[
            act_spec,                        # sa  [TB, d_in]       (bf16)
            full_spec((d_in, two_h)),        # w1  [d_in, 2H]       (bf16)
            full_spec((1, two_h)),           # b1  [1, 2H]          (f32)
            full_spec((two_h, two_h)),       # w2  [2H, 2H] blockdiag (bf16)
            full_spec((1, two_h)),           # b2  [1, 2H]          (f32)
            full_spec((two_h, 2)),           # w3  [2H, 2]  blockdiag (bf16)
            full_spec((1, 2)),               # b3  [1, 2]           (f32)
        ],
        out_specs=pl.BlockSpec((TB, 2), lambda i: (i, 0)),
        compiler_params=pltpu.CompilerParams(
            dimension_semantics=("parallel",)),
    )(sa, fused["w1"], fused["b1"], fused["w2"], fused["b2"],
      fused["w3"], fused["b3"])

    return out[:, 0:1], out[:, 1:2]


def init_critic_params(key, n_actions, n_states, hidden_size):
    """Per-head f32 params, nn.Linear-style U(-1/sqrt(fan_in), 1/sqrt(fan_in))."""
    d_in = n_states + n_actions
    dims = [(d_in, hidden_size), (hidden_size, hidden_size), (hidden_size, 1)]
    params = {}
    for head in ("a", "b"):
        for i, (fi, fo) in enumerate(dims, start=1):
            key, kw, kb = jax.random.split(key, 3)
            bound = 1.0 / jnp.sqrt(jnp.float32(fi))
            params[f"w{i}{head}"] = jax.random.uniform(
                kw, (fi, fo), jnp.float32, -bound, bound)
            params[f"b{i}{head}"] = jax.random.uniform(
                kb, (1, fo), jnp.float32, -bound, bound)
    return params


def pack_critic_params(p, hidden_size):
    """Pack the two heads into fused / block-diagonal bf16 weights (done once)."""
    H = hidden_size
    z = jnp.zeros((H, H), jnp.float32)
    z1 = jnp.zeros((H, 1), jnp.float32)
    fused = {
        # Layer 1: concat heads along the output axis -> [d_in, 2H]
        "w1": jnp.concatenate([p["w1a"], p["w1b"]], axis=1).astype(jnp.bfloat16),
        "b1": jnp.concatenate([p["b1a"], p["b1b"]], axis=1),                 # f32
        # Layer 2: block-diagonal so the heads stay independent -> [2H, 2H]
        "w2": jnp.block([[p["w2a"], z], [z, p["w2b"]]]).astype(jnp.bfloat16),
        "b2": jnp.concatenate([p["b2a"], p["b2b"]], axis=1),                 # f32
        # Layer 3: block-diagonal -> [2H, 2], one output column per head
        "w3": jnp.block([[p["w3a"], z1], [z1, p["w3b"]]]).astype(jnp.bfloat16),
        "b3": jnp.concatenate([p["b3a"], p["b3b"]], axis=1),                 # f32
    }
    return fused


def _reference(state, action, p):
    """Pure f32 reference matching the PyTorch module."""
    sa = jnp.concatenate([state, action], axis=-1)

    def head(h):
        x = jnp.maximum(sa @ p[f"w1{h}"] + p[f"b1{h}"], 0.0)
        x = jnp.maximum(x @ p[f"w2{h}"] + p[f"b2{h}"], 0.0)
        return x @ p[f"w3{h}"] + p[f"b3{h}"]

    return head("a"), head("b")


if __name__ == "__main__":
    n_actions, n_states, hidden_size = 8, 24, 32

    key = jax.random.PRNGKey(0)
    kp, ks, ka = jax.random.split(key, 3)
    params = init_critic_params(kp, n_actions, n_states, hidden_size)
    fused = pack_critic_params(params, hidden_size)   # packed + bf16-cast once

    # ---- Small batch (module-scale shapes): force the Pallas path to exercise
    # the kernel itself (the default path would take the jnp fallback here).
    B_small = 8
    state = jax.random.normal(ks, (B_small, n_states), jnp.float32)
    action = jax.random.normal(ka, (B_small, n_actions), jnp.float32)

    fwd_forced = jax.jit(functools.partial(critic_forward, force_pallas=True))
    q1, q2 = fwd_forced(state, action, fused)
    jax.block_until_ready((q1, q2))

    r1, r2 = _reference(state, action, params)
    assert q1.shape == (B_small, 1) and q2.shape == (B_small, 1)
    assert jnp.allclose(q1, r1, atol=5e-2, rtol=5e-2)   # bf16 weights/activations
    assert jnp.allclose(q2, r2, atol=5e-2, rtol=5e-2)

    # ---- Larger batch: default path -> Pallas kernel with a 2-step grid
    # (TB = 128), so both v7x TensorCores get work and the pipeline runs.
    B_big = 256
    ks2, ka2 = jax.random.split(jax.random.PRNGKey(1))
    state_b = jax.random.normal(ks2, (B_big, n_states), jnp.float32)
    action_b = jax.random.normal(ka2, (B_big, n_actions), jnp.float32)

    fwd = jax.jit(critic_forward)
    q1b, q2b = fwd(state_b, action_b, fused)
    jax.block_until_ready((q1b, q2b))

    r1b, r2b = _reference(state_b, action_b, params)
    assert q1b.shape == (B_big, 1) and q2b.shape == (B_big, 1)
    assert jnp.allclose(q1b, r1b, atol=5e-2, rtol=5e-2)
    assert jnp.allclose(q2b, r2b, atol=5e-2, rtol=5e-2)

    print("KERNEL_OK")
</pallas_src>

<mosaic_0001>
module attributes {stable_mosaic.version = 11 : i64} {
  func.func @_critic_kernel(%arg0: i32, %arg1: memref<8x32xbf16, #tpu.memory_space<vmem>>, %arg2: memref<32x64xbf16, #tpu.memory_space<vmem>>, %arg3: memref<1x64xf32, #tpu.memory_space<vmem>>, %arg4: memref<64x64xbf16, #tpu.memory_space<vmem>>, %arg5: memref<1x64xf32, #tpu.memory_space<vmem>>, %arg6: memref<64x2xbf16, #tpu.memory_space<vmem>>, %arg7: memref<1x2xf32, #tpu.memory_space<vmem>>, %arg8: memref<8x2xf32, #tpu.memory_space<vmem>>) attributes {dimension_semantics = [#tpu.dimension_semantics<parallel>], iteration_bounds = array<i64: 1>, scalar_prefetch = 0 : i64, scratch_operands = 0 : i64, tpu.core_type = #tpu.core_type<tc>, window_params = [{transform_indices = @transform_0, window_bounds = array<i64: 8, 32>}, {pipeline_mode = #tpu.pipeline_mode<synchronous>, transform_indices = @transform_1, window_bounds = array<i64: 32, 64>}, {pipeline_mode = #tpu.pipeline_mode<synchronous>, transform_indices = @transform_2, window_bounds = array<i64: 1, 64>}, {pipeline_mode = #tpu.pipeline_mode<synchronous>, transform_indices = @transform_3, window_bounds = array<i64: 64, 64>}, {pipeline_mode = #tpu.pipeline_mode<synchronous>, transform_indices = @transform_4, window_bounds = array<i64: 1, 64>}, {pipeline_mode = #tpu.pipeline_mode<synchronous>, transform_indices = @transform_5, window_bounds = array<i64: 64, 2>}, {pipeline_mode = #tpu.pipeline_mode<synchronous>, transform_indices = @transform_6, window_bounds = array<i64: 1, 2>}, {transform_indices = @transform_7, window_bounds = array<i64: 8, 2>}]} {
    %c0 = arith.constant 0 : index
    %c0_0 = arith.constant 0 : index
    %0 = vector.load %arg1[%c0, %c0_0] : memref<8x32xbf16, #tpu.memory_space<vmem>>, vector<8x32xbf16>
    %c0_1 = arith.constant 0 : index
    %c0_2 = arith.constant 0 : index
    %1 = vector.load %arg2[%c0_1, %c0_2] : memref<32x64xbf16, #tpu.memory_space<vmem>>, vector<32x64xbf16>
    %cst = arith.constant dense<0.000000e+00> : vector<8x64xf32>
    %2 = tpu.matmul %0, %1, %cst {dimension_numbers = #tpu.dot_dimension_numbers<[1], [0], [0], [1], [0, 0, 1, 1], [], []>} : vector<8x32xbf16>, vector<32x64xbf16>, vector<8x64xf32> -> vector<8x64xf32>
    %c0_3 = arith.constant 0 : index
    %c0_4 = arith.constant 0 : index
    %3 = vector.load %arg3[%c0_3, %c0_4] : memref<1x64xf32, #tpu.memory_space<vmem>>, vector<1x64xf32>
    %4 = vector.broadcast %3 : vector<1x64xf32> to vector<8x64xf32>
    %5 = arith.addf %2, %4 : vector<8x64xf32>
    %cst_5 = arith.constant 0.000000e+00 : f32
    %6 = vector.broadcast %cst_5 : f32 to vector<8x64xf32>
    %7 = arith.maximumf %5, %6 : vector<8x64xf32>
    %8 = arith.truncf %7 : vector<8x64xf32> to vector<8x64xbf16>
    %c0_6 = arith.constant 0 : index
    %c0_7 = arith.constant 0 : index
    %9 = vector.load %arg4[%c0_6, %c0_7] : memref<64x64xbf16, #tpu.memory_space<vmem>>, vector<64x64xbf16>
    %cst_8 = arith.constant dense<0.000000e+00> : vector<8x64xf32>
    %10 = tpu.matmul %8, %9, %cst_8 {dimension_numbers = #tpu.dot_dimension_numbers<[1], [0], [0], [1], [0, 0, 1, 1], [], []>} : vector<8x64xbf16>, vector<64x64xbf16>, vector<8x64xf32> -> vector<8x64xf32>
    %c0_9 = arith.constant 0 : index
    %c0_10 = arith.constant 0 : index
    %11 = vector.load %arg5[%c0_9, %c0_10] : memref<1x64xf32, #tpu.memory_space<vmem>>, vector<1x64xf32>
    %12 = vector.broadcast %11 : vector<1x64xf32> to vector<8x64xf32>
    %13 = arith.addf %10, %12 : vector<8x64xf32>
    %cst_11 = arith.constant 0.000000e+00 : f32
    %14 = vector.broadcast %cst_11 : f32 to vector<8x64xf32>
    %15 = arith.maximumf %13, %14 : vector<8x64xf32>
    %16 = arith.truncf %15 : vector<8x64xf32> to vector<8x64xbf16>
    %c0_12 = arith.constant 0 : index
    %c0_13 = arith.constant 0 : index
    %17 = vector.load %arg6[%c0_12, %c0_13] : memref<64x2xbf16, #tpu.memory_space<vmem>>, vector<64x2xbf16>
    %cst_14 = arith.constant dense<0.000000e+00> : vector<8x2xf32>
    %18 = tpu.matmul %16, %17, %cst_14 {dimension_numbers = #tpu.dot_dimension_numbers<[1], [0], [0], [1], [0, 0, 1, 1], [], []>} : vector<8x64xbf16>, vector<64x2xbf16>, vector<8x2xf32> -> vector<8x2xf32>
    %c0_15 = arith.constant 0 : index
    %c0_16 = arith.constant 0 : index
    %19 = vector.load %arg7[%c0_15, %c0_16] : memref<1x2xf32, #tpu.memory_space<vmem>>, vector<1x2xf32>
    %20 = vector.broadcast %19 : vector<1x2xf32> to vector<8x2xf32>
    %21 = arith.addf %18, %20 : vector<8x2xf32>
    %c0_17 = arith.constant 0 : index
    %c0_18 = arith.constant 0 : index
    %22 = vector.load %arg8[%c0_17, %c0_18] : memref<8x2xf32, #tpu.memory_space<vmem>>, vector<8x2xf32>
    tpu.vector_store %arg8[%c0_17, %c0_18], %21 {strides = array<i32>} : memref<8x2xf32, #tpu.memory_space<vmem>>, vector<8x2xf32>,
    return
  }
  func.func @transform_0(%arg0: i32) -> (i32, i32) {
    %c0_i32 = arith.constant 0 : i32
    %c0_i32_0 = arith.constant 0 : i32
    return %arg0, %c0_i32 : i32, i32
  }
  func.func @transform_1(%arg0: i32) -> (i32, i32) {
    %c0_i32 = arith.constant 0 : i32
    %c0_i32_0 = arith.constant 0 : i32
    %c0_i32_1 = arith.constant 0 : i32
    return %c0_i32, %c0_i32_0 : i32, i32
  }
  func.func @transform_2(%arg0: i32) -> (i32, i32) {
    %c0_i32 = arith.constant 0 : i32
    %c0_i32_0 = arith.constant 0 : i32
    %c0_i32_1 = arith.constant 0 : i32
    return %c0_i32, %c0_i32_0 : i32, i32
  }
  func.func @transform_3(%arg0: i32) -> (i32, i32) {
    %c0_i32 = arith.constant 0 : i32
    %c0_i32_0 = arith.constant 0 : i32
    %c0_i32_1 = arith.constant 0 : i32
    return %c0_i32, %c0_i32_0 : i32, i32
  }
  func.func @transform_4(%arg0: i32) -> (i32, i32) {
    %c0_i32 = arith.constant 0 : i32
    %c0_i32_0 = arith.constant 0 : i32
    %c0_i32_1 = arith.constant 0 : i32
    return %c0_i32, %c0_i32_0 : i32, i32
  }
  func.func @transform_5(%arg0: i32) -> (i32, i32) {
    %c0_i32 = arith.constant 0 : i32
    %c0_i32_0 = arith.constant 0 : i32
    %c0_i32_1 = arith.constant 0 : i32
    return %c0_i32, %c0_i32_0 : i32, i32
  }
  func.func @transform_6(%arg0: i32) -> (i32, i32) {
    %c0_i32 = arith.constant 0 : i32
    %c0_i32_0 = arith.constant 0 : i32
    %c0_i32_1 = arith.constant 0 : i32
    return %c0_i32, %c0_i32_0 : i32, i32
  }
  func.func @transform_7(%arg0: i32) -> (i32, i32) {
    %c0_i32 = arith.constant 0 : i32
    %c0_i32_0 = arith.constant 0 : i32
    return %arg0, %c0_i32 : i32, i32
  }
}

</mosaic_0001>

<bundles_post_ra>
// kernel: critic_forward.1
= control target key start
LH: loop header
LB: loop body
LE: loop exit
PB: predicated region body
PF: predicated region fallthrough
CT: control target
= control target key end

     0   :  { %v343_v0 = vmov 0.0   ;;  %vm344_vm0 = vmmov 0   ;;  %vm51_vm1 = vcmask 261120   ;;  %vm136_vm2 = vcmask 523264   ;;  %s435_s1 = inlined_call_operand.vmem [shape: bf16[32,64], index: 1, kind: input, shape index: {}]   ;;  %s436_s3 = inlined_call_operand.vmem [shape: bf16[64,64], index: 3, kind: input, shape index: {}]   ;;  %s437_s0 = inlined_call_operand.vmem [shape: bf16[8,32], index: 0, kind: input, shape index: {}]   ;;  %s438_s5 = inlined_call_operand.vmem [shape: bf16[64,2], index: 5, kind: input, shape index: {}]   ;;  %s439_s2 = inlined_call_operand.vmem [shape: f32[1,64], index: 2, kind: input, shape index: {}]   ;;  %s440_s4 = inlined_call_operand.vmem [shape: f32[1,64], index: 4, kind: input, shape index: {}]   ;;  %s441_s6 = inlined_call_operand.vmem [shape: f32[1,2], index: 6, kind: input, shape index: {}]   ;;  %s442_s7 = inlined_call_operand.vmem [shape: f32[8,2], index: 7, kind: output, shape index: {}]  }
   0x1   :  { %299 = vmatprep.subr.bf16.mxu0 %v343_v0  ;;  %v333_v1 = vld [vmem:[%s435_s1 + $0x8] sm:$0xff]   ;;  %303 = vmatprep.mubr.msk.bf16.mxu0 %vm344_vm0, %v343_v0  ;;  %v334_v2 = vld [vmem:[%s435_s1] sm:$0xff]   ;;  %v335_v3 = vld [vmem:[%s436_s3 + $0x18] sm:$0xff]   ;;  %vm264_vm3 = vcmask 15360  }
   0x2   :  { %307 = vmatprep.subr.bf16.mxu1 %v343_v0  ;;  %315 = vmatprep.mubr.msk.bf16.mxu1 %vm344_vm0, %v343_v0  ;;  %v336_v4 = vld [vmem:[%s436_s3 + $0x10] sm:$0xff]   ;;  %v27_v5 = vld [vmem:[%s437_s0] sm:$0xf]  ;;  %v337_v6 = vld [vmem:[%s436_s3 + $0x8] sm:$0xff]  }
   0x3   :  { %300 = vmatpush3.bf16.msra.mxu0 %v333_v1  ;;  %308 = vmatpush3.bf16.msra.mxu1 %v335_v3  ;;  %v338_v7 = vld [vmem:[%s436_s3] sm:$0xff]   ;;  %v339_v8 = vld [vmem:[%s438_s5 + $0x18] sm:$0xff]   ;;  %v340_v9 = vld [vmem:[%s438_s5 + $0x10] sm:$0xff]  }
   0x4   :  { %301 = vmatprep.subr.bf16.mxu0 %v343_v0  ;;  %309 = vmatprep.subr.bf16.mxu1 %v343_v0  ;;  %v270_v10 = vld [vmem:[%s439_s2] ss:$0 sm:$0xff]  ;;  %v341_v18 = vld [vmem:[%s438_s5 + $0x8] sm:$0xff]  }
   0x5   :  { %v342_v19 = vld [vmem:[%s438_s5] sm:$0xff]  }
   0x6   :  { %v274_v20 = vld [vmem:[%s440_s4] ss:$0 sm:$0xff] }
   0x7   :  { %302 = vmatpush3.bf16.msra.mxu0 %v334_v2  ;;  %310 = vmatpush3.bf16.msra.mxu1 %v336_v4  ;;  %v280_v28 = vld [vmem:[%s441_s6] ss:$0 sm:$0xff] }
   0x8   :  { %319 = vmatprep.subr.bf16.mxu0 %v343_v0  ;;  %311 = vmatprep.subr.bf16.mxu1 %v343_v0 }
   0xa   :  { %304 = vmatmul.mubr.msk.bf16.vlgmr.msra.gmra.mxu0 %vm51_vm1, %v27_v5 }
   0xb   :  { %327 = vmatprep.mubr.msk.bf16.mxu0 %vm344_vm0, %v343_v0  ;;  %312 = vmatpush3.bf16.msra.mxu1 %v337_v6 }
   0xc   :  { %313 = vmatprep.subr.bf16.mxu1 %v343_v0  ;;  %320 = vmatpush3.bf16.msra.mxu0 %v339_v8 }
   0xd   :  { %321 = vmatprep.subr.bf16.mxu0 %v343_v0 }
   0xf   :  { %314 = vmatpush3.bf16.msra.mxu1 %v338_v7 }
  0x10   :  { %322 = vmatpush3.bf16.msra.mxu0 %v340_v9 }
  0x11   :  { %323 = vmatprep.subr.bf16.mxu0 %v343_v0 }
  0x14   :  { %324 = vmatpush3.bf16.msra.mxu0 %v341_v18 }
  0x15   :  { %325 = vmatprep.subr.bf16.mxu0 %v343_v0 }
  0x18   :  { %326 = vmatpush3.bf16.msra.mxu0 %v342_v19 }
  0xca   :  { %v89_v11 = vpop.f32.mrf.mxu0 }
  0xcb   :  { %v90_v12 = vadd.f32 %v270_v10, %v89_v11 }
  0xcc   :  { %v305_v13 = vpop.f32.mrf.mxu0 }
  0xcd   :  { %v95_v14 = vmax.f32 %v90_v12, 0.0 }
  0xce   :  { %v92_v15 = vpop.f32.mrf.mxu0 }
  0xcf   :  { %v96_v16 = vpack.c.bf16 %v95_v14, %v95_v14 }
  0xd0   :  { %v306_v17 = vpop.f32.mrf.mxu0 }
  0xd1   :  { %316 = vmatmul.mubr.msk.bf16.vlgmr.msra.gmra.mxu1 %vm136_vm2, %v96_v16 }
 0x191   :  { %v174_v21 = vpop.f32.mrf.mxu1 }
 0x192   :  { %v175_v22 = vadd.f32 %v274_v20, %v174_v21 }
 0x193   :  { %v317_v23 = vpop.f32.mrf.mxu1 }
 0x194   :  { %v180_v24 = vmax.f32 %v175_v22, 0.0 }
 0x195   :  { %v177_v25 = vpop.f32.mrf.mxu1 }
 0x196   :  { %v181_v26 = vpack.c.bf16 %v180_v24, %v180_v24 }
 0x197   :  { %v318_v27 = vpop.f32.mrf.mxu1 }
 0x198   :  { %328 = vmatmul.mubr.msk.bf16.vlgmr.msra.gmra.mxu0 %vm136_vm2, %v181_v26 }
 0x258   :  { %v258_v29 = vpop.f32.mrf.mxu0 }
 0x259   :  { %v259_v30 = vadd.f32 %v280_v28, %v258_v29 }
 0x25a   :  { %v329_v31 = vpop.f32.mrf.mxu0 }
 0x25b   :  { %265 = vst.msk [vmem:[%s442_s7] sm:$0xff] %vm264_vm3, %v259_v30 }
 0x25c   :  { %v261_v32 = vpop.f32.mrf.mxu0 }
 0x25e   :  { %v330_v33 = vpop.f32.mrf.mxu0 }

</bundles_post_ra>
